<compile_context>
chip_gen: v5e
topology: v5e:2x2
jax: 0.10.0
libtpu: 0.0.40
codegen_flags: <defaults>
</compile_context>

<pallas_src>
import jax
import jax.numpy as jnp
from jax.experimental import pallas as pl
from jax.experimental.pallas import tpu as pltpu

RAD = 3.0          # UnitSphere(rad=3) default
D_OUT = 4          # inner model output channels (1 sdf + 3 aux features)
LATENT_SIZE = 32   # carried through from SDFModel.__init__ (unused in forward)
LANES = 128        # vreg lane width
TILE_ROWS = 1024   # sublane-rows per grid step -> 128K points/step (safe on v5e/v6e/v7x)


def unit_sphere_kernel(pts_ref, w_ref, b_ref, out_ref):
    # pts_ref: (3, R, 128)     f32 VMEM   (channel-major: x / y / z planes)
    # w_ref:   (3, D_OUT)      f32 SMEM
    # b_ref:   (D_OUT,)        f32 SMEM
    # out_ref: (D_OUT, R, 128) f32 VMEM
    x = pts_ref[0]                                   # (R, 128), dense tile
    y = pts_ref[1]
    z = pts_ref[2]

    # sphere SDF: lane-wise VPU math, sqrt on the EUP (no cross-lane reduce)
    sph = jnp.sqrt(x * x + y * y + z * z) - RAD      # (R, 128)

    # inner linear head, scalarized (12 FMAs/point on the VPU; MXU unused)
    for c in range(D_OUT):
        ic = w_ref[0, c] * x + w_ref[1, c] * y + w_ref[2, c] * z + b_ref[c]
        if c == 0:
            ic = jnp.maximum(ic, sph)                # channel-0 clamp to sphere
        out_ref[c] = ic                              # full (R, 128) unmasked vst


def unit_sphere_forward_cm(pts_cm, w, b):
    """Channel-major fast path.

    pts_cm: (3, N) f32 with N % 128 == 0, w: (3, D_OUT), b: (D_OUT,)
    returns (D_OUT, N) f32.  No transposes, no padding copies.
    """
    assert pts_cm.shape[0] == 3 and pts_cm.shape[1] % LANES == 0
    n = pts_cm.shape[1]
    m = n // LANES                                   # sublane-rows total
    r = min(TILE_ROWS, m)                            # rows per grid step
    grid = (pl.cdiv(m, r),)                          # ragged last block is fine

    pts3 = pts_cm.reshape(3, m, LANES)               # free reshape (splits last dim)

    out3 = pl.pallas_call(
        unit_sphere_kernel,
        out_shape=jax.ShapeDtypeStruct((D_OUT, m, LANES), jnp.float32),
        grid_spec=pltpu.PrefetchScalarGridSpec(
            num_scalar_prefetch=0,
            grid=grid,
            in_specs=[
                pl.BlockSpec((3, r, LANES), lambda i: (0, i, 0)),        # pts tile
                pl.BlockSpec(memory_space=pltpu.MemorySpace.SMEM),       # W (12 scalars)
                pl.BlockSpec(memory_space=pltpu.MemorySpace.SMEM),       # b (4 scalars)
            ],
            out_specs=pl.BlockSpec((D_OUT, r, LANES), lambda i: (0, i, 0)),
        ),
        compiler_params=pltpu.CompilerParams(
            dimension_semantics=("parallel",)),       # lets v7x shard steps on 2 TCs
        cost_estimate=pl.CostEstimate(
            flops=31 * n, transcendentals=n, bytes_accessed=28 * n),
    )(pts3, w, b)

    return out3.reshape(D_OUT, n)                    # free reshape


def unit_sphere_forward(pts, w, b):
    """AoS compatibility adapter: pts (..., 3) -> (..., D_OUT).

    Matches the PyTorch module's layout; pays one transpose each way.  Prefer
    `unit_sphere_forward_cm` (SoA) in real pipelines to avoid the extra HBM
    passes.
    """
    lead = pts.shape[:-1]
    flat = pts.reshape(-1, 3).astype(jnp.float32)
    n = flat.shape[0]
    n_pad = pl.cdiv(n, LANES) * LANES                # pad only to the next 128 points
    pts_cm = flat.T
    if n_pad != n:
        pts_cm = jnp.pad(pts_cm, ((0, 0), (0, n_pad - n)))
    out_cm = unit_sphere_forward_cm(pts_cm, w, b)
    return out_cm[:, :n].T.reshape(*lead, D_OUT)


def unit_sphere_reference(pts, w, b):
    sph = jnp.linalg.norm(pts, axis=-1) - RAD
    inner = pts @ w + b
    first = jnp.maximum(inner[..., 0], sph)[..., None]
    return jnp.concatenate([first, inner[..., 1:]], axis=-1)


# TODO(synk): SDFModel.normals (autograd wrt inputs) and set_to_sphere
# (Adam training loop) are not part of the forward pass and are not kernelized.

if __name__ == "__main__":
    key = jax.random.PRNGKey(0)
    k_pts, k_w, k_b = jax.random.split(key, 3)

    # small example: batch=2, 128 points each, xyz coords
    pts = 4.0 * jax.random.normal(k_pts, (2, 128, 3), dtype=jnp.float32)

    # deterministic inner-model parameters (synthetic, not a checkpoint)
    w = 0.1 * jax.random.normal(k_w, (3, D_OUT), dtype=jnp.float32)
    b = 0.1 * jax.random.normal(k_b, (D_OUT,), dtype=jnp.float32)

    ref = unit_sphere_reference(pts, w, b)

    # 1) channel-major fast path (recommended contract: no HBM transposes/pads)
    pts_cm = pts.reshape(-1, 3).T                    # (3, 256) demo input build only
    out_cm = jax.block_until_ready(unit_sphere_forward_cm(pts_cm, w, b))
    ref_cm = ref.reshape(-1, D_OUT).T
    assert out_cm.shape == (D_OUT, 2 * 128)
    assert jnp.allclose(out_cm, ref_cm, atol=1e-5, rtol=1e-5), "CM mismatch vs reference"

    # 2) AoS adapter keeps the PyTorch (..., 3) -> (..., D_OUT) semantics
    out = jax.block_until_ready(unit_sphere_forward(pts, w, b))
    assert out.shape == (2, 128, D_OUT)
    assert jnp.allclose(out, ref, atol=1e-5, rtol=1e-5), "AoS mismatch vs reference"

    print("KERNEL_OK")
</pallas_src>

<mosaic_0001>
module attributes {stable_mosaic.version = 11 : i64} {
  func.func @unit_sphere_kernel(%arg0: i32, %arg1: memref<3x2x128xf32, #tpu.memory_space<vmem>>, %arg2: memref<3x4xf32, #tpu.memory_space<smem>>, %arg3: memref<4xf32, #tpu.memory_space<smem>>, %arg4: memref<4x2x128xf32, #tpu.memory_space<vmem>>) attributes {dimension_semantics = [#tpu.dimension_semantics<parallel>], iteration_bounds = array<i64: 1>, scalar_prefetch = 0 : i64, scratch_operands = 0 : i64, tpu.core_type = #tpu.core_type<tc>, window_params = [{transform_indices = @transform_0, window_bounds = array<i64: 3, 2, 128>}, {transform_indices = @transform_1, window_bounds = array<i64: 3, 4>}, {transform_indices = @transform_2, window_bounds = array<i64: 4>}, {transform_indices = @transform_3, window_bounds = array<i64: 4, 2, 128>}]} {
    %c0 = arith.constant 0 : index
    %c0_0 = arith.constant 0 : index
    %c0_1 = arith.constant 0 : index
    %0 = vector.load %arg1[%c0, %c0_0, %c0_1] : memref<3x2x128xf32, #tpu.memory_space<vmem>>, vector<1x2x128xf32>
    %1 = vector.shape_cast %0 : vector<1x2x128xf32> to vector<2x128xf32>
    %c1 = arith.constant 1 : index
    %c0_2 = arith.constant 0 : index
    %c0_3 = arith.constant 0 : index
    %2 = vector.load %arg1[%c1, %c0_2, %c0_3] : memref<3x2x128xf32, #tpu.memory_space<vmem>>, vector<1x2x128xf32>
    %3 = vector.shape_cast %2 : vector<1x2x128xf32> to vector<2x128xf32>
    %c2 = arith.constant 2 : index
    %c0_4 = arith.constant 0 : index
    %c0_5 = arith.constant 0 : index
    %4 = vector.load %arg1[%c2, %c0_4, %c0_5] : memref<3x2x128xf32, #tpu.memory_space<vmem>>, vector<1x2x128xf32>
    %5 = vector.shape_cast %4 : vector<1x2x128xf32> to vector<2x128xf32>
    %6 = arith.mulf %1, %1 : vector<2x128xf32>
    %7 = arith.mulf %3, %3 : vector<2x128xf32>
    %8 = arith.addf %6, %7 : vector<2x128xf32>
    %9 = arith.mulf %5, %5 : vector<2x128xf32>
    %10 = arith.addf %8, %9 : vector<2x128xf32>
    %11 = math.sqrt %10 : vector<2x128xf32>
    %cst = arith.constant 3.000000e+00 : f32
    %12 = vector.broadcast %cst : f32 to vector<2x128xf32>
    %13 = arith.subf %11, %12 : vector<2x128xf32>
    %c0_6 = arith.constant 0 : index
    %c0_7 = arith.constant 0 : index
    %14 = memref.load %arg2[%c0_6, %c0_7] : memref<3x4xf32, #tpu.memory_space<smem>>
    %15 = vector.broadcast %14 : f32 to vector<2x128xf32>
    %16 = arith.mulf %15, %1 : vector<2x128xf32>
    %c1_8 = arith.constant 1 : index
    %c0_9 = arith.constant 0 : index
    %17 = memref.load %arg2[%c1_8, %c0_9] : memref<3x4xf32, #tpu.memory_space<smem>>
    %18 = vector.broadcast %17 : f32 to vector<2x128xf32>
    %19 = arith.mulf %18, %3 : vector<2x128xf32>
    %20 = arith.addf %16, %19 : vector<2x128xf32>
    %c2_10 = arith.constant 2 : index
    %c0_11 = arith.constant 0 : index
    %21 = memref.load %arg2[%c2_10, %c0_11] : memref<3x4xf32, #tpu.memory_space<smem>>
    %22 = vector.broadcast %21 : f32 to vector<2x128xf32>
    %23 = arith.mulf %22, %5 : vector<2x128xf32>
    %24 = arith.addf %20, %23 : vector<2x128xf32>
    %c0_12 = arith.constant 0 : index
    %25 = memref.load %arg3[%c0_12] : memref<4xf32, #tpu.memory_space<smem>>
    %26 = vector.broadcast %25 : f32 to vector<2x128xf32>
    %27 = arith.addf %24, %26 : vector<2x128xf32>
    %28 = arith.maximumf %27, %13 : vector<2x128xf32>
    %c0_13 = arith.constant 0 : index
    %c0_14 = arith.constant 0 : index
    %c0_15 = arith.constant 0 : index
    %29 = vector.load %arg4[%c0_13, %c0_14, %c0_15] : memref<4x2x128xf32, #tpu.memory_space<vmem>>, vector<1x2x128xf32>
    %30 = vector.shape_cast %29 : vector<1x2x128xf32> to vector<2x128xf32>
    %31 = vector.shape_cast %28 : vector<2x128xf32> to vector<1x2x128xf32>
    tpu.vector_store %arg4[%c0_13, %c0_14, %c0_15], %31 {strides = array<i32>} : memref<4x2x128xf32, #tpu.memory_space<vmem>>, vector<1x2x128xf32>,
    %c0_16 = arith.constant 0 : index
    %c1_17 = arith.constant 1 : index
    %32 = memref.load %arg2[%c0_16, %c1_17] : memref<3x4xf32, #tpu.memory_space<smem>>
    %33 = vector.broadcast %32 : f32 to vector<2x128xf32>
    %34 = arith.mulf %33, %1 : vector<2x128xf32>
    %c1_18 = arith.constant 1 : index
    %c1_19 = arith.constant 1 : index
    %35 = memref.load %arg2[%c1_18, %c1_19] : memref<3x4xf32, #tpu.memory_space<smem>>
    %36 = vector.broadcast %35 : f32 to vector<2x128xf32>
    %37 = arith.mulf %36, %3 : vector<2x128xf32>
    %38 = arith.addf %34, %37 : vector<2x128xf32>
    %c2_20 = arith.constant 2 : index
    %c1_21 = arith.constant 1 : index
    %39 = memref.load %arg2[%c2_20, %c1_21] : memref<3x4xf32, #tpu.memory_space<smem>>
    %40 = vector.broadcast %39 : f32 to vector<2x128xf32>
    %41 = arith.mulf %40, %5 : vector<2x128xf32>
    %42 = arith.addf %38, %41 : vector<2x128xf32>
    %c1_22 = arith.constant 1 : index
    %43 = memref.load %arg3[%c1_22] : memref<4xf32, #tpu.memory_space<smem>>
    %44 = vector.broadcast %43 : f32 to vector<2x128xf32>
    %45 = arith.addf %42, %44 : vector<2x128xf32>
    %c1_23 = arith.constant 1 : index
    %c0_24 = arith.constant 0 : index
    %c0_25 = arith.constant 0 : index
    %46 = vector.load %arg4[%c1_23, %c0_24, %c0_25] : memref<4x2x128xf32, #tpu.memory_space<vmem>>, vector<1x2x128xf32>
    %47 = vector.shape_cast %46 : vector<1x2x128xf32> to vector<2x128xf32>
    %48 = vector.shape_cast %45 : vector<2x128xf32> to vector<1x2x128xf32>
    tpu.vector_store %arg4[%c1_23, %c0_24, %c0_25], %48 {strides = array<i32>} : memref<4x2x128xf32, #tpu.memory_space<vmem>>, vector<1x2x128xf32>,
    %c0_26 = arith.constant 0 : index
    %c2_27 = arith.constant 2 : index
    %49 = memref.load %arg2[%c0_26, %c2_27] : memref<3x4xf32, #tpu.memory_space<smem>>
    %50 = vector.broadcast %49 : f32 to vector<2x128xf32>
    %51 = arith.mulf %50, %1 : vector<2x128xf32>
    %c1_28 = arith.constant 1 : index
    %c2_29 = arith.constant 2 : index
    %52 = memref.load %arg2[%c1_28, %c2_29] : memref<3x4xf32, #tpu.memory_space<smem>>
    %53 = vector.broadcast %52 : f32 to vector<2x128xf32>
    %54 = arith.mulf %53, %3 : vector<2x128xf32>
    %55 = arith.addf %51, %54 : vector<2x128xf32>
    %c2_30 = arith.constant 2 : index
    %c2_31 = arith.constant 2 : index
    %56 = memref.load %arg2[%c2_30, %c2_31] : memref<3x4xf32, #tpu.memory_space<smem>>
    %57 = vector.broadcast %56 : f32 to vector<2x128xf32>
    %58 = arith.mulf %57, %5 : vector<2x128xf32>
    %59 = arith.addf %55, %58 : vector<2x128xf32>
    %c2_32 = arith.constant 2 : index
    %60 = memref.load %arg3[%c2_32] : memref<4xf32, #tpu.memory_space<smem>>
    %61 = vector.broadcast %60 : f32 to vector<2x128xf32>
    %62 = arith.addf %59, %61 : vector<2x128xf32>
    %c2_33 = arith.constant 2 : index
    %c0_34 = arith.constant 0 : index
    %c0_35 = arith.constant 0 : index
    %63 = vector.load %arg4[%c2_33, %c0_34, %c0_35] : memref<4x2x128xf32, #tpu.memory_space<vmem>>, vector<1x2x128xf32>
    %64 = vector.shape_cast %63 : vector<1x2x128xf32> to vector<2x128xf32>
    %65 = vector.shape_cast %62 : vector<2x128xf32> to vector<1x2x128xf32>
    tpu.vector_store %arg4[%c2_33, %c0_34, %c0_35], %65 {strides = array<i32>} : memref<4x2x128xf32, #tpu.memory_space<vmem>>, vector<1x2x128xf32>,
    %c0_36 = arith.constant 0 : index
    %c3 = arith.constant 3 : index
    %66 = memref.load %arg2[%c0_36, %c3] : memref<3x4xf32, #tpu.memory_space<smem>>
    %67 = vector.broadcast %66 : f32 to vector<2x128xf32>
    %68 = arith.mulf %67, %1 : vector<2x128xf32>
    %c1_37 = arith.constant 1 : index
    %c3_38 = arith.constant 3 : index
    %69 = memref.load %arg2[%c1_37, %c3_38] : memref<3x4xf32, #tpu.memory_space<smem>>
    %70 = vector.broadcast %69 : f32 to vector<2x128xf32>
    %71 = arith.mulf %70, %3 : vector<2x128xf32>
    %72 = arith.addf %68, %71 : vector<2x128xf32>
    %c2_39 = arith.constant 2 : index
    %c3_40 = arith.constant 3 : index
    %73 = memref.load %arg2[%c2_39, %c3_40] : memref<3x4xf32, #tpu.memory_space<smem>>
    %74 = vector.broadcast %73 : f32 to vector<2x128xf32>
    %75 = arith.mulf %74, %5 : vector<2x128xf32>
    %76 = arith.addf %72, %75 : vector<2x128xf32>
    %c3_41 = arith.constant 3 : index
    %77 = memref.load %arg3[%c3_41] : memref<4xf32, #tpu.memory_space<smem>>
    %78 = vector.broadcast %77 : f32 to vector<2x128xf32>
    %79 = arith.addf %76, %78 : vector<2x128xf32>
    %c3_42 = arith.constant 3 : index
    %c0_43 = arith.constant 0 : index
    %c0_44 = arith.constant 0 : index
    %80 = vector.load %arg4[%c3_42, %c0_43, %c0_44] : memref<4x2x128xf32, #tpu.memory_space<vmem>>, vector<1x2x128xf32>
    %81 = vector.shape_cast %80 : vector<1x2x128xf32> to vector<2x128xf32>
    %82 = vector.shape_cast %79 : vector<2x128xf32> to vector<1x2x128xf32>
    tpu.vector_store %arg4[%c3_42, %c0_43, %c0_44], %82 {strides = array<i32>} : memref<4x2x128xf32, #tpu.memory_space<vmem>>, vector<1x2x128xf32>,
    return
  }
  func.func @transform_0(%arg0: i32) -> (i32, i32, i32) {
    %c0_i32 = arith.constant 0 : i32
    %c0_i32_0 = arith.constant 0 : i32
    %c0_i32_1 = arith.constant 0 : i32
    return %c0_i32, %arg0, %c0_i32_0 : i32, i32, i32
  }
  func.func @transform_1(%arg0: i32) -> (i32, i32) {
    %c0_i32 = arith.constant 0 : i32
    %c0_i32_0 = arith.constant 0 : i32
    %c0_i32_1 = arith.constant 0 : i32
    return %c0_i32, %c0_i32_0 : i32, i32
  }
  func.func @transform_2(%arg0: i32) -> i32 {
    %c0_i32 = arith.constant 0 : i32
    %c0_i32_0 = arith.constant 0 : i32
    return %c0_i32 : i32
  }
  func.func @transform_3(%arg0: i32) -> (i32, i32, i32) {
    %c0_i32 = arith.constant 0 : i32
    %c0_i32_0 = arith.constant 0 : i32
    %c0_i32_1 = arith.constant 0 : i32
    return %c0_i32, %arg0, %c0_i32_0 : i32, i32, i32
  }
}

</mosaic_0001>

<bundles_post_ra>
// kernel: tpu_custom_call.1
= control target key start
LH: loop header
LB: loop body
LE: loop exit
PB: predicated region body
PF: predicated region fallthrough
CT: control target
= control target key end

     0   :  { %8 = vsyncpa [#allocation3], 0  ;;  %s343_s0 = inlined_call_operand.hbm [shape: f32[3,2,128], index: 0, kind: input, shape index: {}]   ;;  %s344_s1 = inlined_call_operand.hbm [shape: f32[3,4], index: 1, kind: input, shape index: {}]   ;;  %s345_s2 = inlined_call_operand.vmem [shape: f32[4], index: 2, kind: input, shape index: {}]   ;;  %s346_s3 = inlined_call_operand.hbm [shape: f32[4,2,128], index: 3, kind: output, shape index: {}]  }
   0x1   :  { %9 = vsyncpa [#allocation5], 0 }
   0x2   :  { %10 = vsyncpa [#allocation6], 0 }
   0x3   :  { %11 = vsyncpa [#allocation4], 0  ;;  %s16_s14 = sshll.u32 %s343_s0, 4  ;;  %s267_s15 = smov [#allocation2]   ;;  %s17_s14 = int_to_ptr.hbm [resolvable:$true] %s16_s14 }
   0x4   :  { %s18_s16 = sshll.u32 %s267_s15, 4  ;;  %s30_s19 = sshll.u32 %s344_s1, 4  ;;  %s19_s16 = int_to_ptr.vmem [resolvable:$true] %s18_s16  ;;  %s31_s19 = int_to_ptr.hbm [resolvable:$true] %s30_s19 }
   0x5   :  { %s268_s20 = smov 32   ;;  %s269_s21 = smov 2  }
   0x6   :  { %24 = dma.hbm_to_vmem [thread:$0]  %s17_s14, 96, %s19_s16, [#allocation3], %s268_s20, %s268_s20, %s269_s21  }
   0x7   :  { %s270_s22 = smov [#allocation7]   ;;  %s39_s0 = sshll.u32 %s345_s2, 4  ;;  %s40_s0 = int_to_ptr.vmem [resolvable:$true] %s39_s0 }
   0x8   :  { %33 = dma.hbm_to_smem %s31_s19, 64, %s270_s22, [#allocation5]  }
   0x9   :  { %s271_s25 = smov [#allocation8]  }
   0xa   :  { %42 = dma.vmem_to_smem %s40_s0, 16, %s271_s25, [#allocation6]  }
   0xb   :  { %259 = dma.done.wait [#allocation3], 96  }
   0xc   :  { %260 = vsyncadd [#allocation3], 4294967200 }
   0xd   :  { %261 = dma.done.wait [#allocation5], 64  }
   0xe   :  { %262 = vsyncadd [#allocation5], 4294967232 }
   0xf   :  { %263 = dma.done.wait [#allocation6], 16  }
  0x10   :  { %264 = vsyncadd [#allocation6], 4294967280 }
  0x11   :  { %55 = sfence }
  0x12   :  { %v56_v0 = vld [vmem:[#allocation2] sm:$0x3]  ;;  %v58_v1 = vld [vmem:[#allocation2 + $0x2] sm:$0x3]  ;;  %v305_v2 = vld [vmem:[#allocation2 + $0x4] sm:$0x3] }
  0x13   :  { %v61_v3 = vmul.f32 %v56_v0, %v56_v0  ;;  %v62_v4 = vmul.f32 %v58_v1, %v58_v1  ;;  %v64_v5 = vmul.f32 %v305_v2, %v305_v2  ;;  %s79_s1 = sld [smem:[#allocation7]]  ;;  %s272_s13 = smov [#allocation9]  }
  0x14   :  { %s165_s2 = sld [smem:[#allocation7 + $0x80]]  ;;  %s147_s14 = sshll.u32 %s272_s13, 4  ;;  %s148_s14 = int_to_ptr.vmem [resolvable:$true] %s147_s14 }
  0x15   :  { %v63_v6 = vadd.f32 %v62_v4, %v61_v3  ;;  %s309_s26 = sld [smem:[#allocation7 + $0x100]]  ;;  %s149_s17 = sshll.u32 %s346_s3, 4  ;;  %s150_s17 = int_to_ptr.hbm [resolvable:$true] %s149_s17 }
  0x16   :  { %s311_s27 = sld [smem:[#allocation8]] }
  0x17   :  { %v313_v7 = vadd.f32 %v64_v5, %v63_v6  ;;  %s167_s28 = sld [smem:[#allocation7 + $0x1]] }
  0x18   :  { %s168_s29 = sld [smem:[#allocation7 + $0x81]] }
  0x19   :  { %185 = vrsqrt.f32 %v313_v7  ;;  %s169_s30 = sld [smem:[#allocation7 + $0x101]]  ;;  %v80_v8 = vstv %s79_s1  ;;  %vm73_vm0 = vcmp.eq.f32.partialorder %v313_v7, inf  ;;  %v76_v47 = vand.u32 2147483648, %v313_v7 }
  0x1a   :  { %s316_s4 = sld [smem:[#allocation8 + $0x1]]  ;;  %v83_v9 = vstv %s165_s2  ;;  %v81_v17 = vmul.f32 %v80_v8, %v56_v0  ;;  %vm75_vm1 = vcmp.eq.f32.partialorder %v313_v7, 0.0 }
  0x1b   :  { %s171_s5 = sld [smem:[#allocation7 + $0x2]]  ;;  %v84_v18 = vmul.f32 %v83_v9, %v58_v1  ;;  %v87_v20 = vstv %s309_s26 }
  0x1c   :  { %s172_s6 = sld [smem:[#allocation7 + $0x82]]  ;;  %v88_v32 = vmul.f32 %v87_v20, %v305_v2  ;;  %v91_v48 = vstv %s311_s27 }
  0x1d   :  { %v96_v10 = vstv %s167_s28  ;;  %s173_s7 = sld [smem:[#allocation7 + $0x102]]  ;;  %v85_v31 = vadd.f32 %v84_v18, %v81_v17 }
  0x1e   :  { %v97_v11 = vmul.f32 %v96_v10, %v56_v0  ;;  %v99_v12 = vstv %s168_s29  ;;  %s318_s8 = sld [smem:[#allocation8 + $0x2]] }
  0x1f   :  { %v186_v13 = vpop.eup %185  ;;  %v100_v14 = vmul.f32 %v99_v12, %v58_v1  ;;  %v103_v15 = vstv %s169_s30  ;;  %s175_s9 = sld [smem:[#allocation7 + $0x3]]  ;;  %v89_v45 = vadd.f32 %v88_v32, %v85_v31 }
  0x20   :  { %v67_v16 = vmul.f32 %v186_v13, %v313_v7  ;;  %v104_v19 = vmul.f32 %v103_v15, %v305_v2  ;;  %s176_s10 = sld [smem:[#allocation7 + $0x83]]  ;;  %v107_v24 = vstv %s316_s4 }
  0x21   :  { %v101_v21 = vadd.f32 %v100_v14, %v97_v11  ;;  %v112_v22 = vstv %s171_s5  ;;  %s177_s11 = sld [smem:[#allocation7 + $0x103]]  ;;  %v92_v55 = vadd.f32 %v91_v48, %v89_v45 }
  0x22   :  { %v68_v23 = vmul.f32 %v186_v13, %v67_v16  ;;  %v113_v25 = vmul.f32 %v112_v22, %v56_v0  ;;  %v115_v26 = vstv %s172_s6  ;;  %s324_s12 = sld [smem:[#allocation8 + $0x3]] }
  0x23   :  { %v105_v27 = vadd.f32 %v104_v19, %v101_v21  ;;  %v116_v28 = vmul.f32 %v115_v26, %v58_v1  ;;  %v119_v29 = vstv %s173_s7 }
  0x24   :  { %v69_v30 = vmul.f32 0.5, %v68_v23  ;;  %v120_v33 = vmul.f32 %v119_v29, %v305_v2  ;;  %v123_v38 = vstv %s318_s8 }
  0x25   :  { %v108_v34 = vadd.f32 %v107_v24, %v105_v27  ;;  %v117_v35 = vadd.f32 %v116_v28, %v113_v25  ;;  %v128_v36 = vstv %s175_s9 }
  0x26   :  { %v70_v37 = vsub.f32 1.5, %v69_v30  ;;  %v129_v39 = vmul.f32 %v128_v36, %v56_v0  ;;  %v131_v40 = vstv %s176_s10 }
  0x27   :  { %110 = vst [vmem:[#allocation9 + $0x2] sm:$0x3] %v108_v34  ;;  %v121_v41 = vadd.f32 %v120_v33, %v117_v35  ;;  %v132_v42 = vmul.f32 %v131_v40, %v58_v1  ;;  %v135_v43 = vstv %s177_s11 }
  0x28   :  { %v71_v44 = vmul.f32 %v186_v13, %v70_v37  ;;  %v136_v46 = vmul.f32 %v135_v43, %v305_v2  ;;  %v139_v52 = vstv %s324_s12 }
  0x29   :  { %v124_v49 = vadd.f32 %v123_v38, %v121_v41  ;;  %v133_v50 = vadd.f32 %v132_v42, %v129_v39 }
  0x2a   :  { %v72_v51 = vmul.f32 %v71_v44, %v313_v7 }
  0x2b   :  { %126 = vst [vmem:[#allocation9 + $0x4] sm:$0x3] %v124_v49  ;;  %v137_v53 = vadd.f32 %v136_v46, %v133_v50 }
  0x2c   :  { %v74_v54 = vsel %vm73_vm0, %v313_v7, %v72_v51 }
  0x2d   :  { %v77_v56 = vsel %vm75_vm1, %v76_v47, %v74_v54  ;;  %v140_v57 = vadd.f32 %v139_v52, %v137_v53 }
  0x2e   :  { %v164_v58 = vadd.f32 -3.0, %v77_v56 }
  0x2f   :  { %142 = vst [vmem:[#allocation9 + $0x6] sm:$0x3] %v140_v57 }
  0x30   :  { %v93_v59 = vmax.f32 %v92_v55, %v164_v58 }
  0x32   :  { %94 = vst [vmem:[#allocation9] sm:$0x3] %v93_v59 }
  0x33   :  { %155 = dma.vmem_to_hbm [thread:$0]  %s148_s14, 128, %s150_s17, [#allocation4], %s268_s20, %s268_s20, %s269_s21  }
  0x34   :  { %265 = dma.done.wait [#allocation4], 128  }
  0x35   :  { %266 = vsyncadd [#allocation4], 4294967168 }
  0x36   :  { %160 = vsyncpa [#allocation3], 1 }
  0x37   :  { %161 = vsyncpa [#allocation4], 1 }
  0x38   :  { %162 = vsyncpa [#allocation5], 1 }
  0x39   :  { %163 = vsyncpa [#allocation6], 1 }

</bundles_post_ra>
